<compile_context>
chip_gen: v7x
topology: tpu7x:2x2x1
jax: 0.10.0
libtpu: 0.0.40
codegen_flags: <defaults>
</compile_context>

<pallas_src>
import math

import jax
import jax.numpy as jnp
from jax.experimental import pallas as pl
from jax.experimental.pallas import tpu as pltpu


def _whiten_kernel(x1_ref, x2_ref, x3_ref, y1_ref, y2_ref, y3_ref, mean_ref):
    x1 = x1_ref[...]
    x2 = x2_ref[...]
    x3 = x3_ref[...]
    # torch.mean(torch.stack([x1, x2, x3], dim=1), dim=1)
    mean = (x1 + x2 + x3) * (1.0 / 3.0)
    mean_ref[...] = mean
    y1_ref[...] = x1 - mean
    y2_ref[...] = x2 - mean
    y3_ref[...] = x3 - mean


def whiten(x1, x2, x3, *, block_rows=256):
    """Pallas implementation of Whiten.forward.

    Accepts arrays of identical shape (..., D); returns ([y1, y2, y3], mean)
    with the same shapes/dtypes as the inputs.
    """
    assert x1.shape == x2.shape == x3.shape, "inputs must share a shape"
    assert x1.dtype == x2.dtype == x3.dtype, "inputs must share a dtype"
    orig_shape = x1.shape
    dtype = x1.dtype

    # Flatten leading dims so the kernel always sees (rows, features) with the
    # feature axis on the 128-lane axis.
    d = orig_shape[-1]
    rows = int(math.prod(orig_shape[:-1])) if len(orig_shape) > 1 else 1
    x1_2d = x1.reshape(rows, d)
    x2_2d = x2.reshape(rows, d)
    x3_2d = x3.reshape(rows, d)

    # Row tile: either the whole (small) batch, or a multiple-of-8 tile so the
    # (8, 128) block constraint is satisfied; partial last blocks are handled
    # by the pipeline (elementwise -> safe).
    if rows <= block_rows:
        tb = rows
        grid = (1,)
    else:
        tb = (block_rows // 8) * 8
        grid = (pl.cdiv(rows, tb),)

    spec = pl.BlockSpec((tb, d), lambda i: (i, 0))
    out_shape = tuple(jax.ShapeDtypeStruct((rows, d), dtype) for _ in range(4))

    y1, y2, y3, mean = pl.pallas_call(
        _whiten_kernel,
        grid=grid,
        in_specs=[spec, spec, spec],
        out_specs=(spec, spec, spec, spec),
        out_shape=out_shape,
        compiler_params=pltpu.CompilerParams(
            dimension_semantics=("parallel",),
        ),
    )(x1_2d, x2_2d, x3_2d)

    reshape = lambda a: a.reshape(orig_shape)
    return [reshape(y1), reshape(y2), reshape(y3)], reshape(mean)


if __name__ == "__main__":
    key = jax.random.PRNGKey(0)
    k1, k2, k3 = jax.random.split(key, 3)

    batch, dim = 8, 256
    x1 = jax.random.normal(k1, (batch, dim), jnp.float32)
    x2 = jax.random.normal(k2, (batch, dim), jnp.float32)
    x3 = jax.random.normal(k3, (batch, dim), jnp.float32)

    (y1, y2, y3), mean = whiten(x1, x2, x3)
    jax.block_until_ready(mean)

    # Pure-JAX reference (matches the PyTorch forward).
    mean_ref = (x1 + x2 + x3) / 3.0
    assert mean.shape == (batch, dim) and mean.dtype == jnp.float32
    assert jnp.allclose(mean, mean_ref, atol=1e-5, rtol=1e-5)
    assert jnp.allclose(y1, x1 - mean_ref, atol=1e-5, rtol=1e-5)
    assert jnp.allclose(y2, x2 - mean_ref, atol=1e-5, rtol=1e-5)
    assert jnp.allclose(y3, x3 - mean_ref, atol=1e-5, rtol=1e-5)

    print("KERNEL_OK")
</pallas_src>

<mosaic_0001>
module attributes {stable_mosaic.version = 11 : i64} {
  func.func @_whiten_kernel(%arg0: i32, %arg1: memref<8x256xf32, #tpu.memory_space<vmem>>, %arg2: memref<8x256xf32, #tpu.memory_space<vmem>>, %arg3: memref<8x256xf32, #tpu.memory_space<vmem>>, %arg4: memref<8x256xf32, #tpu.memory_space<vmem>>, %arg5: memref<8x256xf32, #tpu.memory_space<vmem>>, %arg6: memref<8x256xf32, #tpu.memory_space<vmem>>, %arg7: memref<8x256xf32, #tpu.memory_space<vmem>>) attributes {dimension_semantics = [#tpu.dimension_semantics<parallel>], iteration_bounds = array<i64: 1>, scalar_prefetch = 0 : i64, scratch_operands = 0 : i64, tpu.core_type = #tpu.core_type<tc>, window_params = [{transform_indices = @transform_0, window_bounds = array<i64: 8, 256>}, {transform_indices = @transform_1, window_bounds = array<i64: 8, 256>}, {transform_indices = @transform_2, window_bounds = array<i64: 8, 256>}, {transform_indices = @transform_3, window_bounds = array<i64: 8, 256>}, {transform_indices = @transform_4, window_bounds = array<i64: 8, 256>}, {transform_indices = @transform_5, window_bounds = array<i64: 8, 256>}, {transform_indices = @transform_6, window_bounds = array<i64: 8, 256>}]} {
    %c0 = arith.constant 0 : index
    %c0_0 = arith.constant 0 : index
    %0 = vector.load %arg1[%c0, %c0_0] : memref<8x256xf32, #tpu.memory_space<vmem>>, vector<8x256xf32>
    %c0_1 = arith.constant 0 : index
    %c0_2 = arith.constant 0 : index
    %1 = vector.load %arg2[%c0_1, %c0_2] : memref<8x256xf32, #tpu.memory_space<vmem>>, vector<8x256xf32>
    %c0_3 = arith.constant 0 : index
    %c0_4 = arith.constant 0 : index
    %2 = vector.load %arg3[%c0_3, %c0_4] : memref<8x256xf32, #tpu.memory_space<vmem>>, vector<8x256xf32>
    %3 = arith.addf %0, %1 : vector<8x256xf32>
    %4 = arith.addf %3, %2 : vector<8x256xf32>
    %cst = arith.constant 0.333333343 : f32
    %5 = vector.broadcast %cst : f32 to vector<8x256xf32>
    %6 = arith.mulf %4, %5 : vector<8x256xf32>
    %c0_5 = arith.constant 0 : index
    %c0_6 = arith.constant 0 : index
    %7 = vector.load %arg7[%c0_5, %c0_6] : memref<8x256xf32, #tpu.memory_space<vmem>>, vector<8x256xf32>
    tpu.vector_store %arg7[%c0_5, %c0_6], %6 {strides = array<i32>} : memref<8x256xf32, #tpu.memory_space<vmem>>, vector<8x256xf32>,
    %8 = arith.subf %0, %6 : vector<8x256xf32>
    %c0_7 = arith.constant 0 : index
    %c0_8 = arith.constant 0 : index
    %9 = vector.load %arg4[%c0_7, %c0_8] : memref<8x256xf32, #tpu.memory_space<vmem>>, vector<8x256xf32>
    tpu.vector_store %arg4[%c0_7, %c0_8], %8 {strides = array<i32>} : memref<8x256xf32, #tpu.memory_space<vmem>>, vector<8x256xf32>,
    %10 = arith.subf %1, %6 : vector<8x256xf32>
    %c0_9 = arith.constant 0 : index
    %c0_10 = arith.constant 0 : index
    %11 = vector.load %arg5[%c0_9, %c0_10] : memref<8x256xf32, #tpu.memory_space<vmem>>, vector<8x256xf32>
    tpu.vector_store %arg5[%c0_9, %c0_10], %10 {strides = array<i32>} : memref<8x256xf32, #tpu.memory_space<vmem>>, vector<8x256xf32>,
    %12 = arith.subf %2, %6 : vector<8x256xf32>
    %c0_11 = arith.constant 0 : index
    %c0_12 = arith.constant 0 : index
    %13 = vector.load %arg6[%c0_11, %c0_12] : memref<8x256xf32, #tpu.memory_space<vmem>>, vector<8x256xf32>
    tpu.vector_store %arg6[%c0_11, %c0_12], %12 {strides = array<i32>} : memref<8x256xf32, #tpu.memory_space<vmem>>, vector<8x256xf32>,
    return
  }
  func.func @transform_0(%arg0: i32) -> (i32, i32) {
    %c0_i32 = arith.constant 0 : i32
    %c0_i32_0 = arith.constant 0 : i32
    return %arg0, %c0_i32 : i32, i32
  }
  func.func @transform_1(%arg0: i32) -> (i32, i32) {
    %c0_i32 = arith.constant 0 : i32
    %c0_i32_0 = arith.constant 0 : i32
    return %arg0, %c0_i32 : i32, i32
  }
  func.func @transform_2(%arg0: i32) -> (i32, i32) {
    %c0_i32 = arith.constant 0 : i32
    %c0_i32_0 = arith.constant 0 : i32
    return %arg0, %c0_i32 : i32, i32
  }
  func.func @transform_3(%arg0: i32) -> (i32, i32) {
    %c0_i32 = arith.constant 0 : i32
    %c0_i32_0 = arith.constant 0 : i32
    return %arg0, %c0_i32 : i32, i32
  }
  func.func @transform_4(%arg0: i32) -> (i32, i32) {
    %c0_i32 = arith.constant 0 : i32
    %c0_i32_0 = arith.constant 0 : i32
    return %arg0, %c0_i32 : i32, i32
  }
  func.func @transform_5(%arg0: i32) -> (i32, i32) {
    %c0_i32 = arith.constant 0 : i32
    %c0_i32_0 = arith.constant 0 : i32
    return %arg0, %c0_i32 : i32, i32
  }
  func.func @transform_6(%arg0: i32) -> (i32, i32) {
    %c0_i32 = arith.constant 0 : i32
    %c0_i32_0 = arith.constant 0 : i32
    return %arg0, %c0_i32 : i32, i32
  }
}

</mosaic_0001>

<bundles_post_ra>
// kernel: tpu_custom_call.1
= control target key start
LH: loop header
LB: loop body
LE: loop exit
PB: predicated region body
PF: predicated region fallthrough
CT: control target
= control target key end

     0   :  { %12 = vsyncpa [#allocation3], 0  ;;  %s457_s0 = inlined_call_operand.hbm [shape: f32[8,256], index: 0, kind: input, shape index: {}]   ;;  %s458_s1 = inlined_call_operand.hbm [shape: f32[8,256], index: 1, kind: input, shape index: {}]   ;;  %s459_s2 = inlined_call_operand.hbm [shape: f32[8,256], index: 2, kind: input, shape index: {}]   ;;  %s460_s3 = inlined_call_operand.hbm [shape: f32[8,256], index: 3, kind: output, shape index: {0}]   ;;  %s461_s4 = inlined_call_operand.hbm [shape: f32[8,256], index: 4, kind: output, shape index: {1}]   ;;  %s462_s5 = inlined_call_operand.hbm [shape: f32[8,256], index: 5, kind: output, shape index: {2}]   ;;  %s463_s6 = inlined_call_operand.hbm [shape: f32[8,256], index: 6, kind: output, shape index: {3}]  }
   0x1   :  { %13 = vsyncpa [#allocation6], 0 }
   0x2   :  { %14 = vsyncpa [#allocation4], 0 }
   0x3   :  { %15 = vsyncpa [#allocation10], 0 }
   0x4   :  { %16 = vsyncpa [#allocation13], 0  ;;  %s310_s21 = smov [#allocation5]   ;;  %s311_s23 = smov [#allocation2]  }
   0x5   :  { %s33_s22 = sshll.u32 %s310_s21, 4  ;;  %s23_s24 = sshll.u32 %s311_s23, 4  ;;  %s34_s22 = int_to_ptr.vmem [resolvable:$true] %s33_s22  ;;  %s24_s24 = int_to_ptr.vmem [resolvable:$true] %s23_s24 }
   0x6   :  { %s146_s27 = scalar_lea.hbm %s458_s1, 256 }
   0x7   :  { %p147_p0 = scmp.ne.s32.totalorder %s458_s1, %s146_s27  ;;  %p150_p1 = scmp.lt.u32.totalorder %s146_s27, %s458_s1 }
   0x9   :  { %p152_p2 = pnand %p150_p1, %p147_p0 }
   0xb   :  { %155 = shalt.err (!%p152_p2)
}
   0xc   :  { %s156_s8 = scalar_lea.vmem %s34_s22, 256  ;;  %p161_p4 = scmp.lt.s32.totalorder %s34_s22, %s34_s22 }
   0xd   :  { %p157_p3 = scmp.ne.s32.totalorder %s34_s22, %s156_s8  ;;  %p162_p5 = scmp.lt.s32.totalorder %s156_s8, %s156_s8 }
   0xf   :  { %p163_p6 = por %p162_p5, %p161_p4 }
  0x11   :  { %p164_p7 = pnand %p163_p6, %p157_p3 }
  0x13   :  { %167 = shalt.err (!%p164_p7)
}
  0x14   :  { %36 = dma.hbm_to_vmem [thread:$0]  %s458_s1, 256, %s34_s22, [#allocation6]  }
  0x15   :  { %s168_s13 = scalar_lea.hbm %s457_s0, 256 }
  0x16   :  { %p169_p8 = scmp.ne.s32.totalorder %s457_s0, %s168_s13  ;;  %p172_p9 = scmp.lt.u32.totalorder %s168_s13, %s457_s0 }
  0x18   :  { %p174_p10 = pnand %p172_p9, %p169_p8 }
  0x1a   :  { %177 = shalt.err (!%p174_p10)
}
  0x1b   :  { %s178_s18 = scalar_lea.vmem %s24_s24, 256  ;;  %p183_p12 = scmp.lt.s32.totalorder %s24_s24, %s24_s24 }
  0x1c   :  { %p179_p11 = scmp.ne.s32.totalorder %s24_s24, %s178_s18  ;;  %p184_p13 = scmp.lt.s32.totalorder %s178_s18, %s178_s18 }
  0x1e   :  { %p185_p0 = por %p184_p13, %p183_p12 }
  0x20   :  { %p186_p1 = pnand %p185_p0, %p179_p11 }
  0x22   :  { %189 = shalt.err (!%p186_p1)
}
  0x23   :  { %26 = dma.hbm_to_vmem [thread:$0]  %s457_s0, 256, %s24_s24, [#allocation3]  }
  0x24   :  { %s312_s20 = smov [#allocation7]   ;;  %s190_s25 = scalar_lea.hbm %s459_s2, 256 }
  0x25   :  { %s43_s21 = sshll.u32 %s312_s20, 4  ;;  %p191_p2 = scmp.ne.s32.totalorder %s459_s2, %s190_s25  ;;  %s44_s21 = int_to_ptr.vmem [resolvable:$true] %s43_s21 }
  0x26   :  { %p194_p3 = scmp.lt.u32.totalorder %s190_s25, %s459_s2 }
  0x28   :  { %p196_p4 = pnand %p194_p3, %p191_p2 }
  0x2a   :  { %199 = shalt.err (!%p196_p4)
}
  0x2b   :  { %s200_s30 = scalar_lea.vmem %s44_s21, 256  ;;  %p205_p6 = scmp.lt.s32.totalorder %s44_s21, %s44_s21 }
  0x2c   :  { %p201_p5 = scmp.ne.s32.totalorder %s44_s21, %s200_s30  ;;  %p206_p7 = scmp.lt.s32.totalorder %s200_s30, %s200_s30 }
  0x2e   :  { %p207_p8 = por %p206_p7, %p205_p6 }
  0x30   :  { %p208_p9 = pnand %p207_p8, %p201_p5 }
  0x32   :  { %211 = shalt.err (!%p208_p9)
}
  0x33   :  { %46 = dma.hbm_to_vmem [thread:$0]  %s459_s2, 256, %s44_s21, [#allocation6]  }
  0x34   :  { %300 = dma.done.wait [#allocation3], 256  }
  0x35   :  { %301 = vsyncadd [#allocation3], 4294967040 }
  0x36   :  { %302 = dma.done.wait [#allocation6], 512  }
  0x37   :  { %303 = vsyncadd [#allocation6], 4294966784  ;;  %v56_v0 = vld [vmem:[#allocation2] sm:$0xff]  ;;  %v58_v1 = vld [vmem:[#allocation5] sm:$0xff]  ;;  %s313_s7 = smov [#allocation12]   ;;  %s314_s9 = smov [#allocation9]  }
  0x38   :  { %v60_v2 = vld [vmem:[#allocation7] sm:$0xff]  ;;  %v62_v3 = vadd.f32 %v58_v1, %v56_v0  ;;  %v57_v4 = vld [vmem:[#allocation2 + $0x8] sm:$0xff]  ;;  %v59_v5 = vld [vmem:[#allocation5 + $0x8] sm:$0xff]  ;;  %s118_s8 = sshll.u32 %s313_s7, 4  ;;  %s98_s10 = sshll.u32 %s314_s9, 4  ;;  %s119_s8 = int_to_ptr.vmem [resolvable:$true] %s118_s8  ;;  %s388_s10 = int_to_ptr.vmem [resolvable:$true] %s98_s10 }
  0x39   :  { %v61_v6 = vld [vmem:[#allocation7 + $0x8] sm:$0xff]  ;;  %v63_v7 = vadd.f32 %v59_v5, %v57_v4  ;;  %s315_s2 = smov [#allocation8]   ;;  %s316_s12 = smov [#allocation11]  }
  0x3a   :  { %v64_v8 = vadd.f32 %v62_v3, %v60_v2  ;;  %s88_s11 = sshll.u32 %s315_s2, 4  ;;  %s108_s13 = sshll.u32 %s316_s12, 4  ;;  %s390_s11 = int_to_ptr.vmem [resolvable:$true] %s88_s11  ;;  %s404_s13 = int_to_ptr.vmem [resolvable:$true] %s108_s13 }
  0x3b   :  { %v65_v9 = vadd.f32 %v63_v7, %v61_v6  ;;  %s212_s14 = scalar_lea.vmem %s119_s8, 256  ;;  %p217_p11 = scmp.lt.s32.totalorder %s119_s8, %s119_s8 }
  0x3c   :  { %v66_v10 = vmul.f32 0.33333334, %v64_v8  ;;  %p213_p10 = scmp.ne.s32.totalorder %s119_s8, %s212_s14  ;;  %p218_p12 = scmp.lt.s32.totalorder %s212_s14, %s212_s14 }
  0x3d   :  { %v67_v11 = vmul.f32 0.33333334, %v65_v9 }
  0x3e   :  { %v74_v12 = vsub.f32 %v58_v1, %v66_v10  ;;  %68 = vst [vmem:[#allocation12] sm:$0xff] %v66_v10  ;;  %v70_v13 = vsub.f32 %v56_v0, %v66_v10  ;;  %v78_v14 = vsub.f32 %v60_v2, %v66_v10  ;;  %p219_p13 = por %p218_p12, %p217_p11 }
  0x3f   :  { %v75_v15 = vsub.f32 %v59_v5, %v67_v11  ;;  %69 = vst [vmem:[#allocation12 + $0x8] sm:$0xff] %v67_v11  ;;  %v71_v16 = vsub.f32 %v57_v4, %v67_v11  ;;  %v79_v17 = vsub.f32 %v61_v6, %v67_v11 }
  0x40   :  { %76 = vst [vmem:[#allocation9] sm:$0xff] %v74_v12  ;;  %72 = vst [vmem:[#allocation8] sm:$0xff] %v70_v13  ;;  %p220_p0 = pnand %p219_p13, %p213_p10 }
  0x41   :  { %80 = vst [vmem:[#allocation11] sm:$0xff] %v78_v14 }
  0x42   :  { %223 = shalt.err (!%p220_p0)
}
  0x43   :  { %s224_s17 = scalar_lea.hbm %s463_s6, 256 }
  0x44   :  { %p225_p1 = scmp.ne.s32.totalorder %s463_s6, %s224_s17  ;;  %p228_p2 = scmp.lt.u32.totalorder %s224_s17, %s463_s6 }
  0x46   :  { %p230_p3 = pnand %p228_p2, %p225_p1 }
  0x48   :  { %233 = shalt.err (!%p230_p3)
}
  0x49   :  { %121 = dma.vmem_to_hbm [thread:$0]  %s119_s8, 256, %s463_s6, [#allocation13]   ;;  %77 = vst [vmem:[#allocation9 + $0x8] sm:$0xff] %v75_v15  ;;  %73 = vst [vmem:[#allocation8 + $0x8] sm:$0xff] %v71_v16 }
  0x4a   :  { %81 = vst [vmem:[#allocation11 + $0x8] sm:$0xff] %v79_v17  ;;  %s234_s23 = scalar_lea.vmem %s388_s10, 256  ;;  %p239_p5 = scmp.lt.s32.totalorder %s388_s10, %s388_s10 }
  0x4b   :  { %p235_p4 = scmp.ne.s32.totalorder %s388_s10, %s234_s23  ;;  %p240_p6 = scmp.lt.s32.totalorder %s234_s23, %s234_s23 }
  0x4d   :  { %p241_p7 = por %p240_p6, %p239_p5 }
  0x4f   :  { %p242_p8 = pnand %p241_p7, %p235_p4 }
  0x51   :  { %245 = shalt.err (!%p242_p8)
}
  0x52   :  { %s246_s27 = scalar_lea.hbm %s461_s4, 256 }
  0x53   :  { %p247_p9 = scmp.ne.s32.totalorder %s461_s4, %s246_s27  ;;  %p250_p10 = scmp.lt.u32.totalorder %s246_s27, %s461_s4 }
  0x55   :  { %p252_p11 = pnand %p250_p10, %p247_p9 }
  0x57   :  { %255 = shalt.err (!%p252_p11)
}
  0x58   :  { %101 = dma.vmem_to_hbm [thread:$0]  %s388_s10, 256, %s461_s4, [#allocation10]  }
  0x59   :  { %s256_s7 = scalar_lea.vmem %s390_s11, 256  ;;  %p261_p13 = scmp.lt.s32.totalorder %s390_s11, %s390_s11 }
  0x5a   :  { %p257_p12 = scmp.ne.s32.totalorder %s390_s11, %s256_s7  ;;  %p262_p0 = scmp.lt.s32.totalorder %s256_s7, %s256_s7 }
  0x5c   :  { %p263_p1 = por %p262_p0, %p261_p13 }
  0x5e   :  { %p264_p2 = pnand %p263_p1, %p257_p12 }
  0x60   :  { %267 = shalt.err (!%p264_p2)
}
  0x61   :  { %s268_s2 = scalar_lea.hbm %s460_s3, 256 }
  0x62   :  { %p269_p3 = scmp.ne.s32.totalorder %s460_s3, %s268_s2  ;;  %p272_p4 = scmp.lt.u32.totalorder %s268_s2, %s460_s3 }
  0x64   :  { %p274_p5 = pnand %p272_p4, %p269_p3 }
  0x66   :  { %277 = shalt.err (!%p274_p5)
}
  0x67   :  { %91 = dma.vmem_to_hbm [thread:$0]  %s390_s11, 256, %s460_s3, [#allocation4]  }
  0x68   :  { %s278_s17 = scalar_lea.vmem %s404_s13, 256  ;;  %p283_p7 = scmp.lt.s32.totalorder %s404_s13, %s404_s13 }
  0x69   :  { %p279_p6 = scmp.ne.s32.totalorder %s404_s13, %s278_s17  ;;  %p284_p8 = scmp.lt.s32.totalorder %s278_s17, %s278_s17 }
  0x6b   :  { %p285_p9 = por %p284_p8, %p283_p7 }
  0x6d   :  { %p286_p10 = pnand %p285_p9, %p279_p6 }
  0x6f   :  { %289 = shalt.err (!%p286_p10)
}
  0x70   :  { %s290_s19 = scalar_lea.hbm %s462_s5, 256 }
  0x71   :  { %p291_p11 = scmp.ne.s32.totalorder %s462_s5, %s290_s19  ;;  %p294_p12 = scmp.lt.u32.totalorder %s290_s19, %s462_s5 }
  0x73   :  { %p296_p13 = pnand %p294_p12, %p291_p11 }
  0x75   :  { %299 = shalt.err (!%p296_p13)
}
  0x76   :  { %111 = dma.vmem_to_hbm [thread:$0]  %s404_s13, 256, %s462_s5, [#allocation10]  }
  0x77   :  { %304 = dma.done.wait [#allocation4], 256  }
  0x78   :  { %305 = vsyncadd [#allocation4], 4294967040 }
  0x79   :  { %306 = dma.done.wait [#allocation10], 512  }
  0x7a   :  { %307 = vsyncadd [#allocation10], 4294966784 }
  0x7b   :  { %308 = dma.done.wait [#allocation13], 256  }
  0x7c   :  { %309 = vsyncadd [#allocation13], 4294967040 }
  0x7d   :  { %134 = vsyncpa [#allocation3], 1 }
  0x7e   :  { %135 = vsyncpa [#allocation6], 1 }
  0x7f   :  { %136 = vsyncpa [#allocation4], 1 }
  0x80   :  { %137 = vsyncpa [#allocation10], 1 }
  0x81   :  { %138 = vsyncpa [#allocation13], 1 }

</bundles_post_ra>
